<compile_context>
chip_gen: v7x
topology: tpu7x:2x2x1
jax: 0.10.0
libtpu: 0.0.40
codegen_flags: <defaults>
</compile_context>

<pallas_src>
import functools

import jax
import jax.numpy as jnp
from jax.experimental import pallas as pl
from jax.experimental.pallas import tpu as pltpu

_LANE = 128
_SUBLANE = 8
# Conservative budgets that fit every current chip (v7x: 64 MiB VMEM / core;
# v5e / v6e: 128 MiB).  Tiles are sized against ~32 MiB; 48 MiB of scoped VMEM
# is requested so double-buffering always has headroom.
_TILE_VMEM_BUDGET = 32 * 1024 * 1024
_VMEM_LIMIT_BYTES = 48 * 1024 * 1024


def _round_up(v, m):
    return ((v + m - 1) // m) * m


def nonlinear_probe_kernel(x_ref, w1_ref, b1_ref, w2_ref, b2_ref, o_ref, h_acc):
    """One (batch-tile, K-tile) grid step.

    Grid = (batch blocks, D_in blocks).  The hidden pre-activation is
    accumulated in f32 VMEM scratch across the K (D_in) axis; the ReLU, the
    second matmul, the biases and the store happen only on the last K step.
    """
    k = pl.program_id(1)

    @pl.when(k == 0)
    def _init():
        h_acc[...] = jnp.zeros_like(h_acc)

    # Linear 1 partial: [tb, tk] @ [tk, H] accumulated in f32.
    h_acc[...] += jnp.dot(x_ref[...], w1_ref[...],
                          preferred_element_type=jnp.float32)

    @pl.when(k == pl.num_programs(1) - 1)
    def _finalize():
        h = jnp.maximum(h_acc[...] + b1_ref[...], 0.0)
        # Linear 2: [tb, H] @ [H, D_out] (+ bias), f32 accumulation on the MXU.
        y = jnp.dot(h.astype(w2_ref.dtype), w2_ref[...],
                    preferred_element_type=jnp.float32)
        o_ref[...] = (y + b2_ref[...]).astype(o_ref.dtype)


def nonlinear_probe(x, w1, b1, w2, b2, *, block_b=None, block_k=None,
                    compute_dtype=jnp.bfloat16):
    """Fused Linear -> ReLU -> Linear.

    x:  [B, D_in]
    w1: [D_in, H]   b1: [H] or [1, H]
    w2: [H, D_out]  b2: [D_out] or [1, D_out]
    returns [B, D_out] float32

    `compute_dtype` is the streaming dtype for x / W1 / W2 (bf16 by default;
    accumulation is always f32).  Use jnp.float32 for bit-tighter results.
    """
    B, D_in = x.shape
    H = w1.shape[1]
    D_out = w2.shape[1]

    cdt = jnp.dtype(compute_dtype)
    x_bytes = cdt.itemsize
    w_bytes = cdt.itemsize

    # ---- padded, lane/sublane-friendly problem dims -------------------------
    H_p = _round_up(H, _LANE)
    D_out_p = _round_up(D_out, _LANE)            # lane-dense output (unmasked vst)
    if block_k is None:
        block_k = 512 if D_in > 512 else _round_up(D_in, _LANE)
    block_k = _round_up(block_k, _LANE)
    D_in_p = _round_up(D_in, block_k)

    # ---- batch tile sized from a VMEM budget ---------------------------------
    if block_b is None:
        fixed = (2 * block_k * H_p * w_bytes         # W1 K-tile, double-buffered
                 + 2 * H_p * D_out_p * w_bytes       # W2 (resident, 2 bufs)
                 + 2 * (H_p + D_out_p) * 4)          # biases (f32)
        per_row = (2 * block_k * x_bytes             # x tile, double-buffered
                   + 2 * D_out_p * 4                 # out tile, double-buffered
                   + H_p * 4)                        # f32 hidden accumulator
        block_b = max(16, (_TILE_VMEM_BUDGET - fixed) // per_row)
        block_b = min(512, (block_b // 16) * 16)
    if B <= block_b:
        block_b = _round_up(B, _SUBLANE)
        B_pad = block_b
    else:
        block_b = _round_up(block_b, 16)             # bf16-safe sublane multiple
        B_pad = _round_up(B, block_b)

    grid = (B_pad // block_b, D_in_p // block_k)

    # ---- zero-pad operands (padding contributes exactly zero) ---------------
    x_p = jnp.pad(x.astype(cdt), ((0, B_pad - B), (0, D_in_p - D_in)))
    w1_p = jnp.pad(w1.astype(cdt), ((0, D_in_p - D_in), (0, H_p - H)))
    b1_p = jnp.pad(jnp.asarray(b1, jnp.float32).reshape(1, H),
                   ((0, 0), (0, H_p - H)))
    w2_p = jnp.pad(w2.astype(cdt), ((0, H_p - H), (0, D_out_p - D_out)))
    b2_p = jnp.pad(jnp.asarray(b2, jnp.float32).reshape(1, D_out),
                   ((0, 0), (0, D_out_p - D_out)))

    cost = pl.CostEstimate(
        flops=2 * B * (D_in * H + H * D_out),
        transcendentals=0,
        bytes_accessed=(B_pad * D_in_p * x_bytes
                        + D_in_p * H_p * w_bytes
                        + H_p * D_out_p * w_bytes
                        + (H_p + D_out_p) * 4
                        + B_pad * D_out_p * 4),
    )

    out = pl.pallas_call(
        nonlinear_probe_kernel,
        out_shape=jax.ShapeDtypeStruct((B_pad, D_out_p), jnp.float32),
        grid_spec=pltpu.PrefetchScalarGridSpec(
            num_scalar_prefetch=0,
            grid=grid,
            in_specs=[
                pl.BlockSpec((block_b, block_k), lambda i, k: (i, k)),   # x tile
                pl.BlockSpec((block_k, H_p), lambda i, k: (k, 0)),       # W1 K-tile
                pl.BlockSpec((1, H_p), lambda i, k: (0, 0)),             # b1 (resident)
                pl.BlockSpec((H_p, D_out_p), lambda i, k: (0, 0)),       # W2 (resident)
                pl.BlockSpec((1, D_out_p), lambda i, k: (0, 0)),         # b2 (resident)
            ],
            out_specs=pl.BlockSpec((block_b, D_out_p), lambda i, k: (i, 0)),
            scratch_shapes=[pltpu.VMEM((block_b, H_p), jnp.float32)],
        ),
        compiler_params=pltpu.CompilerParams(
            dimension_semantics=("parallel", "arbitrary"),
            vmem_limit_bytes=_VMEM_LIMIT_BYTES,
        ),
        cost_estimate=cost,
    )(x_p, w1_p, b1_p, w2_p, b2_p)

    return out[:B, :D_out]


def _make_params(key, d_in, h, d_out):
    kw1, kb1, kw2, kb2 = jax.random.split(key, 4)
    lim1 = 1.0 / jnp.sqrt(jnp.float32(d_in))
    w1 = jax.random.uniform(kw1, (d_in, h), jnp.float32, -lim1, lim1)   # [in, out]
    b1 = jax.random.uniform(kb1, (1, h), jnp.float32, -lim1, lim1)
    lim2 = 1.0 / jnp.sqrt(jnp.float32(h))
    w2 = jax.random.uniform(kw2, (h, d_out), jnp.float32, -lim2, lim2)  # [in, out]
    b2 = jax.random.uniform(kb2, (1, d_out), jnp.float32, -lim2, lim2)
    return w1, b1, w2, b2


def _ref(x, w1, b1, w2, b2):
    return jnp.maximum(x @ w1 + b1, 0.0) @ w2 + b2


if __name__ == "__main__":
    key = jax.random.PRNGKey(0)
    k1, k2, kp1, kp2 = jax.random.split(key, 4)

    # TODO(synk): at these toy sizes plain XLA matmuls beat kernel-launch +
    # grid overhead; the Pallas path is intended for large-B / large-D_in runs.

    # Case 1: module-default tiny shapes, auto tiling, f32 streaming.
    B, D_IN, H, D_OUT = 8, 32, 128, 16
    x = jax.random.normal(k1, (B, D_IN), dtype=jnp.float32)
    w1, b1, w2, b2 = _make_params(kp1, D_IN, H, D_OUT)
    out_f32 = jax.block_until_ready(
        nonlinear_probe(x, w1, b1, w2, b2, compute_dtype=jnp.float32))
    ref1 = _ref(x, w1, b1, w2, b2)
    assert out_f32.shape == (B, D_OUT)
    assert jnp.allclose(out_f32, ref1, atol=1e-4, rtol=1e-4)

    # Case 2: exercises batch tiling, the D_in reduction axis, zero-padding of
    # every axis, and bf16 streaming with f32 accumulation.
    B2, D_IN2, D_OUT2 = 32, 200, 16
    x2 = jax.random.normal(k2, (B2, D_IN2), dtype=jnp.float32)
    w1b, b1b, w2b, b2b = _make_params(kp2, D_IN2, H, D_OUT2)
    out_bf16 = jax.block_until_ready(
        nonlinear_probe(x2, w1b, b1b, w2b, b2b,
                        block_b=16, block_k=128,
                        compute_dtype=jnp.bfloat16))
    ref2 = _ref(x2, w1b, b1b, w2b, b2b)
    assert out_bf16.shape == (B2, D_OUT2)
    assert jnp.allclose(out_bf16, ref2, atol=5e-2, rtol=5e-2)

    print("KERNEL_OK")
</pallas_src>

<mosaic_0001>
module attributes {stable_mosaic.version = 11 : i64} {
  func.func @nonlinear_probe_kernel(%arg0: i32, %arg1: i32, %arg2: memref<8x128xf32, #tpu.memory_space<vmem>>, %arg3: memref<128x128xf32, #tpu.memory_space<vmem>>, %arg4: memref<1x128xf32, #tpu.memory_space<vmem>>, %arg5: memref<128x128xf32, #tpu.memory_space<vmem>>, %arg6: memref<1x128xf32, #tpu.memory_space<vmem>>, %arg7: memref<8x128xf32, #tpu.memory_space<vmem>>, %arg8: memref<8x128xf32, #tpu.memory_space<vmem>>) attributes {dimension_semantics = [#tpu.dimension_semantics<parallel>, #tpu.dimension_semantics<arbitrary>], iteration_bounds = array<i64: 1, 1>, scalar_prefetch = 0 : i64, scratch_operands = 1 : i64, tpu.core_type = #tpu.core_type<tc>, window_params = [{transform_indices = @transform_0, window_bounds = array<i64: 8, 128>}, {transform_indices = @transform_1, window_bounds = array<i64: 128, 128>}, {pipeline_mode = #tpu.pipeline_mode<synchronous>, transform_indices = @transform_2, window_bounds = array<i64: 1, 128>}, {pipeline_mode = #tpu.pipeline_mode<synchronous>, transform_indices = @transform_3, window_bounds = array<i64: 128, 128>}, {pipeline_mode = #tpu.pipeline_mode<synchronous>, transform_indices = @transform_4, window_bounds = array<i64: 1, 128>}, {transform_indices = @transform_5, window_bounds = array<i64: 8, 128>}]} {
    %c0_i32 = arith.constant 0 : i32
    %0 = arith.cmpi eq, %arg1, %c0_i32 : i32
    %1 = arith.extui %0 : i1 to i32
    %c0_i32_0 = arith.constant 0 : i32
    %2 = arith.cmpi ne, %1, %c0_i32_0 : i32
    scf.if %2 {
      %cst_10 = arith.constant 0.000000e+00 : f32
      %12 = vector.broadcast %cst_10 : f32 to vector<8x128xf32>
      %c0_11 = arith.constant 0 : index
      %c0_12 = arith.constant 0 : index
      %13 = vector.load %arg8[%c0_11, %c0_12] : memref<8x128xf32, #tpu.memory_space<vmem>>, vector<8x128xf32>
      tpu.vector_store %arg8[%c0_11, %c0_12], %12 {strides = array<i32>} : memref<8x128xf32, #tpu.memory_space<vmem>>, vector<8x128xf32>,
    } else {
    }
    %c0 = arith.constant 0 : index
    %c0_1 = arith.constant 0 : index
    %3 = vector.load %arg8[%c0, %c0_1] : memref<8x128xf32, #tpu.memory_space<vmem>>, vector<8x128xf32>
    %c0_2 = arith.constant 0 : index
    %c0_3 = arith.constant 0 : index
    %4 = vector.load %arg2[%c0_2, %c0_3] : memref<8x128xf32, #tpu.memory_space<vmem>>, vector<8x128xf32>
    %c0_4 = arith.constant 0 : index
    %c0_5 = arith.constant 0 : index
    %5 = vector.load %arg3[%c0_4, %c0_5] : memref<128x128xf32, #tpu.memory_space<vmem>>, vector<128x128xf32>
    %cst = arith.constant dense<0.000000e+00> : vector<8x128xf32>
    %6 = tpu.matmul %4, %5, %cst {dimension_numbers = #tpu.dot_dimension_numbers<[1], [0], [0], [1], [0, 0, 1, 1], [], []>} : vector<8x128xf32>, vector<128x128xf32>, vector<8x128xf32> -> vector<8x128xf32>
    %7 = arith.addf %3, %6 : vector<8x128xf32>
    %c0_6 = arith.constant 0 : index
    %c0_7 = arith.constant 0 : index
    %8 = vector.load %arg8[%c0_6, %c0_7] : memref<8x128xf32, #tpu.memory_space<vmem>>, vector<8x128xf32>
    tpu.vector_store %arg8[%c0_6, %c0_7], %7 {strides = array<i32>} : memref<8x128xf32, #tpu.memory_space<vmem>>, vector<8x128xf32>,
    %c0_i32_8 = arith.constant 0 : i32
    %9 = arith.cmpi eq, %arg1, %c0_i32_8 : i32
    %10 = arith.extui %9 : i1 to i32
    %c0_i32_9 = arith.constant 0 : i32
    %11 = arith.cmpi ne, %10, %c0_i32_9 : i32
    scf.if %11 {
      %c0_10 = arith.constant 0 : index
      %c0_11 = arith.constant 0 : index
      %12 = vector.load %arg8[%c0_10, %c0_11] : memref<8x128xf32, #tpu.memory_space<vmem>>, vector<8x128xf32>
      %c0_12 = arith.constant 0 : index
      %c0_13 = arith.constant 0 : index
      %13 = vector.load %arg4[%c0_12, %c0_13] : memref<1x128xf32, #tpu.memory_space<vmem>>, vector<1x128xf32>
      %14 = vector.broadcast %13 : vector<1x128xf32> to vector<8x128xf32>
      %15 = arith.addf %12, %14 : vector<8x128xf32>
      %cst_14 = arith.constant 0.000000e+00 : f32
      %16 = vector.broadcast %cst_14 : f32 to vector<8x128xf32>
      %17 = arith.maximumf %15, %16 : vector<8x128xf32>
      %c0_15 = arith.constant 0 : index
      %c0_16 = arith.constant 0 : index
      %18 = vector.load %arg5[%c0_15, %c0_16] : memref<128x128xf32, #tpu.memory_space<vmem>>, vector<128x128xf32>
      %cst_17 = arith.constant dense<0.000000e+00> : vector<8x128xf32>
      %19 = tpu.matmul %17, %18, %cst_17 {dimension_numbers = #tpu.dot_dimension_numbers<[1], [0], [0], [1], [0, 0, 1, 1], [], []>} : vector<8x128xf32>, vector<128x128xf32>, vector<8x128xf32> -> vector<8x128xf32>
      %c0_18 = arith.constant 0 : index
      %c0_19 = arith.constant 0 : index
      %20 = vector.load %arg6[%c0_18, %c0_19] : memref<1x128xf32, #tpu.memory_space<vmem>>, vector<1x128xf32>
      %21 = vector.broadcast %20 : vector<1x128xf32> to vector<8x128xf32>
      %22 = arith.addf %19, %21 : vector<8x128xf32>
      %c0_20 = arith.constant 0 : index
      %c0_21 = arith.constant 0 : index
      %23 = vector.load %arg7[%c0_20, %c0_21] : memref<8x128xf32, #tpu.memory_space<vmem>>, vector<8x128xf32>
      tpu.vector_store %arg7[%c0_20, %c0_21], %22 {strides = array<i32>} : memref<8x128xf32, #tpu.memory_space<vmem>>, vector<8x128xf32>,
    } else {
    }
    return
  }
  func.func @transform_0(%arg0: i32, %arg1: i32) -> (i32, i32) {
    %c0_i32 = arith.constant 0 : i32
    return %arg0, %arg1 : i32, i32
  }
  func.func @transform_1(%arg0: i32, %arg1: i32) -> (i32, i32) {
    %c0_i32 = arith.constant 0 : i32
    %c0_i32_0 = arith.constant 0 : i32
    return %arg1, %c0_i32 : i32, i32
  }
  func.func @transform_2(%arg0: i32, %arg1: i32) -> (i32, i32) {
    %c0_i32 = arith.constant 0 : i32
    %c0_i32_0 = arith.constant 0 : i32
    %c0_i32_1 = arith.constant 0 : i32
    return %c0_i32, %c0_i32_0 : i32, i32
  }
  func.func @transform_3(%arg0: i32, %arg1: i32) -> (i32, i32) {
    %c0_i32 = arith.constant 0 : i32
    %c0_i32_0 = arith.constant 0 : i32
    %c0_i32_1 = arith.constant 0 : i32
    return %c0_i32, %c0_i32_0 : i32, i32
  }
  func.func @transform_4(%arg0: i32, %arg1: i32) -> (i32, i32) {
    %c0_i32 = arith.constant 0 : i32
    %c0_i32_0 = arith.constant 0 : i32
    %c0_i32_1 = arith.constant 0 : i32
    return %c0_i32, %c0_i32_0 : i32, i32
  }
  func.func @transform_5(%arg0: i32, %arg1: i32) -> (i32, i32) {
    %c0_i32 = arith.constant 0 : i32
    %c0_i32_0 = arith.constant 0 : i32
    return %arg0, %c0_i32 : i32, i32
  }
}

</mosaic_0001>

<bundles_post_ra>
// kernel: tpu_custom_call.1
= control target key start
LH: loop header
LB: loop body
LE: loop exit
PB: predicated region body
PF: predicated region fallthrough
CT: control target
= control target key end

     0   :  { %10 = vsyncpa [#allocation4], 0  ;;  %s650_s0 = inlined_call_operand.hbm [shape: f32[8,128], index: 0, kind: input, shape index: {}]   ;;  %s651_s1 = inlined_call_operand.hbm [shape: f32[128,128], index: 1, kind: input, shape index: {}]   ;;  %s652_s2 = inlined_call_operand.vmem [shape: f32[1,128], index: 2, kind: input, shape index: {}]   ;;  %s653_s3 = inlined_call_operand.hbm [shape: f32[128,128], index: 3, kind: input, shape index: {}]   ;;  %s654_s4 = inlined_call_operand.vmem [shape: f32[1,128], index: 4, kind: input, shape index: {}]   ;;  %s655_s5 = inlined_call_operand.hbm [shape: f32[8,128], index: 5, kind: output, shape index: {}]  }
   0x1   :  { %11 = vsyncpa [#allocation7], 0 }
   0x2   :  { %12 = vsyncpa [#allocation5], 0  ;;  %s535_s18 = smov [#allocation6]   ;;  %s441_s22 = scalar_lea.hbm %s651_s1, 2048 }
   0x3   :  { %s28_s19 = sshll.u32 %s535_s18, 4  ;;  %p442_p0 = scmp.ne.s32.totalorder %s651_s1, %s441_s22  ;;  %s29_s19 = int_to_ptr.vmem [resolvable:$true] %s28_s19 }
   0x4   :  { %p445_p1 = scmp.lt.u32.totalorder %s441_s22, %s651_s1 }
   0x6   :  { %p447_p2 = pnand %p445_p1, %p442_p0 }
   0x8   :  { %450 = shalt.err (!%p447_p2)
}
   0x9   :  { %s451_s27 = scalar_lea.vmem %s29_s19, 2048  ;;  %p456_p4 = scmp.lt.s32.totalorder %s29_s19, %s29_s19 }
   0xa   :  { %p452_p3 = scmp.ne.s32.totalorder %s29_s19, %s451_s27  ;;  %p457_p5 = scmp.lt.s32.totalorder %s451_s27, %s451_s27 }
   0xc   :  { %p458_p6 = por %p457_p5, %p456_p4 }
   0xe   :  { %p459_p7 = pnand %p458_p6, %p452_p3 }
  0x10   :  { %462 = shalt.err (!%p459_p7)
}
  0x11   :  { %s536_s28 = smov 128   ;;  %s537_s29 = smov 8  }
  0x12   :  { %34 = dma.hbm_to_vmem [thread:$0]  %s651_s1, 2048, %s29_s19, [#allocation7], %s536_s28, %s536_s28, %s537_s29  }
  0x13   :  { %s538_s7 = smov [#allocation3]   ;;  %s539_s9 = smov [#allocation8]  }
  0x14   :  { %s19_s8 = sshll.u32 %s538_s7, 4  ;;  %s42_s10 = sshll.u32 %s539_s9, 4  ;;  %s20_s8 = int_to_ptr.vmem [resolvable:$true] %s19_s8  ;;  %s43_s10 = int_to_ptr.vmem [resolvable:$true] %s42_s10 }
  0x15   :  { %s463_s13 = scalar_lea.hbm %s650_s0, 128 }
  0x16   :  { %p464_p8 = scmp.ne.s32.totalorder %s650_s0, %s463_s13  ;;  %p467_p9 = scmp.lt.u32.totalorder %s463_s13, %s650_s0 }
  0x18   :  { %p469_p10 = pnand %p467_p9, %p464_p8 }
  0x1a   :  { %472 = shalt.err (!%p469_p10)
}
  0x1b   :  { %s473_s1 = scalar_lea.vmem %s20_s8, 128  ;;  %p478_p12 = scmp.lt.s32.totalorder %s20_s8, %s20_s8 }
  0x1c   :  { %p474_p11 = scmp.ne.s32.totalorder %s20_s8, %s473_s1  ;;  %p479_p13 = scmp.lt.s32.totalorder %s473_s1, %s473_s1 }
  0x1e   :  { %p480_p0 = por %p479_p13, %p478_p12 }
  0x20   :  { %p481_p1 = pnand %p480_p0, %p474_p11 }
  0x22   :  { %484 = shalt.err (!%p481_p1)
}
  0x23   :  { %22 = dma.hbm_to_vmem [thread:$0]  %s650_s0, 128, %s20_s8, [#allocation4]  }
  0x24   :  { %s485_s22 = scalar_lea.hbm %s653_s3, 2048 }
  0x25   :  { %p486_p2 = scmp.ne.s32.totalorder %s653_s3, %s485_s22  ;;  %p489_p3 = scmp.lt.u32.totalorder %s485_s22, %s653_s3 }
  0x27   :  { %p491_p4 = pnand %p489_p3, %p486_p2 }
  0x29   :  { %494 = shalt.err (!%p491_p4)
}
  0x2a   :  { %s495_s27 = scalar_lea.vmem %s43_s10, 2048  ;;  %p500_p6 = scmp.lt.s32.totalorder %s43_s10, %s43_s10 }
  0x2b   :  { %p496_p5 = scmp.ne.s32.totalorder %s43_s10, %s495_s27  ;;  %p501_p7 = scmp.lt.s32.totalorder %s495_s27, %s495_s27 }
  0x2d   :  { %p502_p8 = por %p501_p7, %p500_p6 }
  0x2f   :  { %p503_p9 = pnand %p502_p8, %p496_p5 }
  0x31   :  { %506 = shalt.err (!%p503_p9)
}
  0x32   :  { %48 = dma.hbm_to_vmem [thread:$0]  %s653_s3, 2048, %s43_s10, [#allocation7], %s536_s28, %s536_s28, %s537_s29  }
  0x33   :  { %529 = dma.done.wait [#allocation4], 128  }
  0x34   :  { %530 = vsyncadd [#allocation4], 4294967168 }
  0x35   :  { %531 = dma.done.wait [#allocation7], 4096  }
  0x36   :  { %532 = vsyncadd [#allocation7], 4294963200  ;;  %v540_v0 = vmov 0.0|0.0   ;;  %vm541_vm0 = vmmov 0   ;;  %v542_v1 = vmov 0.0   ;;  %v67_v2 = vld [vmem:[#allocation6] sm:$0xff] }
  0x37   :  { %384 = vmatprep.subr.bf16.mxu0 %v540_v0  ;;  %346 = vmatprep.mubr.msk.f32.mxu0 %vm541_vm0, %v542_v1  ;;  %v68_v3 = vld [vmem:[#allocation6 + $0x8] sm:$0xff]  ;;  %v69_v4 = vld [vmem:[#allocation6 + $0x10] sm:$0xff]  ;;  %v70_v6 = vld [vmem:[#allocation6 + $0x18] sm:$0xff]  ;;  %s543_s7 = smov [#allocation9]  }
  0x38   :  { %408 = vmatprep.subr.bf16.mxu1 %v540_v0  ;;  %381 = vmatprep.mubr.msk.f32.mxu1 %vm541_vm0, %v542_v1  ;;  %v385_v5 = vpack.c.bf16 %v68_v3, %v67_v2  ;;  %v388_v7 = vpack.c.bf16 %v70_v6, %v69_v4  ;;  %v71_v8 = vld [vmem:[#allocation6 + $0x20] sm:$0xff]  ;;  %v72_v9 = vld [vmem:[#allocation6 + $0x28] sm:$0xff]  ;;  %v170_v12 = vld [vmem:[#allocation8 + $0x10] sm:$0xff]  ;;  %s268_s8 = sshll.u32 %s543_s7, 4  ;;  %s269_s8 = int_to_ptr.vmem [resolvable:$true] %s268_s8 }
  0x39   :  { %v168_v10 = vld [vmem:[#allocation8] sm:$0xff]  ;;  %v169_v11 = vld [vmem:[#allocation8 + $0x8] sm:$0xff]  ;;  %v171_v13 = vld [vmem:[#allocation8 + $0x18] sm:$0xff]  ;;  %v391_v14 = vpack.c.bf16 %v72_v9, %v71_v8  ;;  %s507_s9 = scalar_lea.vmem %s269_s8, 128  ;;  %p512_p11 = scmp.lt.s32.totalorder %s269_s8, %s269_s8 }
  0x3a   :  { %386 = vmatpush3.bf16.msra.mxu0 %v385_v5  ;;  %v409_v15 = vpack.c.bf16 %v169_v11, %v168_v10  ;;  %v73_v16 = vld [vmem:[#allocation6 + $0x30] sm:$0xff]  ;;  %v74_v17 = vld [vmem:[#allocation6 + $0x38] sm:$0xff]  ;;  %v412_v18 = vpack.c.bf16 %v171_v13, %v170_v12  ;;  %v172_v19 = vld [vmem:[#allocation8 + $0x20] sm:$0xff]  ;;  %p508_p10 = scmp.ne.s32.totalorder %s269_s8, %s507_s9  ;;  %p513_p12 = scmp.lt.s32.totalorder %s507_s9, %s507_s9 }
  0x3b   :  { %387 = vmatprep.subr.bf16.mxu0 %v540_v0  ;;  %v173_v20 = vld [vmem:[#allocation8 + $0x28] sm:$0xff]  ;;  %v394_v21 = vpack.c.bf16 %v74_v17, %v73_v16  ;;  %v75_v22 = vld [vmem:[#allocation6 + $0x40] sm:$0xff]  ;;  %v174_v25 = vld [vmem:[#allocation8 + $0x30] sm:$0xff] }
  0x3c   :  { %410 = vmatpush3.bf16.msra.mxu1 %v409_v15  ;;  %v76_v23 = vld [vmem:[#allocation6 + $0x48] sm:$0xff]  ;;  %v415_v24 = vpack.c.bf16 %v173_v20, %v172_v19  ;;  %v175_v26 = vld [vmem:[#allocation8 + $0x38] sm:$0xff]  ;;  %v77_v28 = vld [vmem:[#allocation6 + $0x50] sm:$0xff]  ;;  %p514_p13 = por %p513_p12, %p512_p11 }
  0x3d   :  { %411 = vmatprep.subr.bf16.mxu1 %v540_v0  ;;  %v397_v27 = vpack.c.bf16 %v76_v23, %v75_v22  ;;  %v78_v29 = vld [vmem:[#allocation6 + $0x58] sm:$0xff]  ;;  %v418_v30 = vpack.c.bf16 %v175_v26, %v174_v25  ;;  %v176_v31 = vld [vmem:[#allocation8 + $0x40] sm:$0xff]  ;;  %v177_v32 = vld [vmem:[#allocation8 + $0x48] sm:$0xff] }
  0x3e   :  { %389 = vmatpush3.bf16.msra.mxu0 %v388_v7  ;;  %v400_v33 = vpack.c.bf16 %v78_v29, %v77_v28  ;;  %v79_v34 = vld [vmem:[#allocation6 + $0x60] sm:$0xff]  ;;  %v80_v35 = vld [vmem:[#allocation6 + $0x68] sm:$0xff]  ;;  %v421_v36 = vpack.c.bf16 %v177_v32, %v176_v31  ;;  %v178_v37 = vld [vmem:[#allocation8 + $0x50] sm:$0xff]  ;;  %p515_p0 = pnand %p514_p13, %p508_p10 }
  0x3f   :  { %390 = vmatprep.subr.bf16.mxu0 %v540_v0  ;;  %v179_v38 = vld [vmem:[#allocation8 + $0x58] sm:$0xff]  ;;  %v403_v39 = vpack.c.bf16 %v80_v35, %v79_v34  ;;  %v81_v40 = vld [vmem:[#allocation6 + $0x70] sm:$0xff]  ;;  %v180_v43 = vld [vmem:[#allocation8 + $0x60] sm:$0xff] }
  0x40   :  { %413 = vmatpush3.bf16.msra.mxu1 %v412_v18  ;;  %v82_v41 = vld [vmem:[#allocation6 + $0x78] sm:$0xff]  ;;  %v424_v42 = vpack.c.bf16 %v179_v38, %v178_v37  ;;  %v181_v44 = vld [vmem:[#allocation8 + $0x68] sm:$0xff]  ;;  %v182_v48 = vld [vmem:[#allocation8 + $0x70] sm:$0xff] }
  0x41   :  { %414 = vmatprep.subr.bf16.mxu1 %v540_v0  ;;  %v406_v45 = vpack.c.bf16 %v82_v41, %v81_v40  ;;  %v427_v46 = vpack.c.bf16 %v181_v44, %v180_v43  ;;  %v66_v47 = vld [vmem:[#allocation3] sm:$0xff] }
  0x42   :  { %392 = vmatpush3.bf16.msra.mxu0 %v391_v14  ;;  %v183_v49 = vld [vmem:[#allocation8 + $0x78] sm:$0xff] }
  0x43   :  { %393 = vmatprep.subr.bf16.mxu0 %v540_v0  ;;  %v430_v50 = vpack.c.bf16 %v183_v49, %v182_v48  ;;  %v278_v51 = vld [vmem:[%s652_s2] ss:$0 sm:$0xff] }
  0x44   :  { %416 = vmatpush3.bf16.msra.mxu1 %v415_v24  ;;  %v279_v56 = vld [vmem:[%s654_s4] ss:$0 sm:$0xff] }
  0x45   :  { %417 = vmatprep.subr.bf16.mxu1 %v540_v0 }
  0x46   :  { %395 = vmatpush3.bf16.msra.mxu0 %v394_v21 }
  0x47   :  { %396 = vmatprep.subr.bf16.mxu0 %v540_v0 }
  0x48   :  { %419 = vmatpush3.bf16.msra.mxu1 %v418_v30 }
  0x49   :  { %420 = vmatprep.subr.bf16.mxu1 %v540_v0 }
  0x4a   :  { %398 = vmatpush3.bf16.msra.mxu0 %v397_v27 }
  0x4b   :  { %399 = vmatprep.subr.bf16.mxu0 %v540_v0 }
  0x4c   :  { %422 = vmatpush3.bf16.msra.mxu1 %v421_v36 }
  0x4d   :  { %423 = vmatprep.subr.bf16.mxu1 %v540_v0 }
  0x4e   :  { %401 = vmatpush3.bf16.msra.mxu0 %v400_v33 }
  0x4f   :  { %402 = vmatprep.subr.bf16.mxu0 %v540_v0 }
  0x50   :  { %425 = vmatpush3.bf16.msra.mxu1 %v424_v42 }
  0x51   :  { %426 = vmatprep.subr.bf16.mxu1 %v540_v0 }
  0x52   :  { %404 = vmatpush3.bf16.msra.mxu0 %v403_v39 }
  0x53   :  { %405 = vmatprep.subr.bf16.mxu0 %v540_v0 }
  0x54   :  { %428 = vmatpush3.bf16.msra.mxu1 %v427_v46 }
  0x55   :  { %429 = vmatprep.subr.bf16.mxu1 %v540_v0 }
  0x56   :  { %407 = vmatpush3.bf16.msra.mxu0 %v406_v45 }
  0x58   :  { %431 = vmatpush3.bf16.msra.mxu1 %v430_v50 }
  0x59   :  { %347 = vmatmul.mubr.f32.vlgmr.msra.gmra.mrb[0].mxu0 %v66_v47 }
 0x12c   :  { %v149_v52 = vpop.f32.mrb[0].mxu0 }
 0x12d   :  { %v166_v53 = vadd.f32 %v278_v51, %v149_v52  ;;  %v348_v54 = vpop.f32.mrb[1].mxu0 }
 0x12f   :  { %v167_v55 = vmax.f32 %v166_v53, 0.0 }
 0x131   :  { %382 = vmatmul.mubr.f32.vlgmr.msra.gmra.mrb[0].mxu1 %v167_v55 }
 0x204   :  { %v257_v57 = vpop.f32.mrb[0].mxu1 }
 0x205   :  { %v258_v58 = vadd.f32 %v279_v56, %v257_v57  ;;  %v383_v59 = vpop.f32.mrb[1].mxu1 }
 0x207   :  { %261 = vst [vmem:[#allocation9] sm:$0xff] %v258_v58 }
 0x208   :  { %518 = shalt.err (!%p515_p0)
}
 0x209   :  { %s519_s11 = scalar_lea.hbm %s655_s5, 128 }
 0x20a   :  { %p520_p1 = scmp.ne.s32.totalorder %s655_s5, %s519_s11  ;;  %p523_p2 = scmp.lt.u32.totalorder %s519_s11, %s655_s5 }
 0x20c   :  { %p525_p3 = pnand %p523_p2, %p520_p1 }
 0x20e   :  { %528 = shalt.err (!%p525_p3)
}
 0x20f   :  { %271 = dma.vmem_to_hbm [thread:$0]  %s269_s8, 128, %s655_s5, [#allocation5]  }
 0x210   :  { %533 = dma.done.wait [#allocation5], 128  }
 0x211   :  { %534 = vsyncadd [#allocation5], 4294967168 }
 0x212   :  { %275 = vsyncpa [#allocation4], 1 }
 0x213   :  { %276 = vsyncpa [#allocation7], 1 }
 0x214   :  { %277 = vsyncpa [#allocation5], 1 }

</bundles_post_ra>
